<compile_context>
chip_gen: v5e
topology: v5e:2x2
jax: 0.10.0
libtpu: 0.0.40
codegen_flags: <defaults>
</compile_context>

<pallas_src>
import functools

import jax
import jax.numpy as jnp
from jax import lax
from jax.experimental import pallas as pl
from jax.experimental.pallas import tpu as pltpu

# ---- "config" (deterministic, in-script; mirrors yacs config fields) --------
LOSS_TYPE = "L2"                               # config.train.loss in {L1, L2, SmoothL1}
LABEL_SMOOTHING = 0.1                          # config.train.label_smoothing
TASK_WEIGHTS = {"emotion": 0.7, "gaze": 0.3}   # config.train.task_weights
NUM_EMOTIONS = 4                               # len(config.train.class_weights)

OUT_WIDTH = 128                                # lane-dense output row width


def _total_loss_kernel(logits_ref, labels_ref, cls_w_ref, pred_g_ref,
                       grd_g_ref, out_ref, *, loss_type, label_smoothing,
                       w_emotion, w_gaze):
    logits = logits_ref[...]                              # (B, C) f32
    labels = labels_ref[...]                              # (B, 1) i32
    cls_w = cls_w_ref[...]                                # (1, C) f32
    pred_g = pred_g_ref[...]                              # (B, 2) f32
    grd_g = grd_g_ref[...]                                # (B, 3) f32: flag, target

    B, C = logits.shape

    # ---- emotion loss: weighted, label-smoothed CE, ignore_index = -1 -------
    m = jnp.max(logits, axis=-1, keepdims=True)
    z = logits - m
    lse = jnp.log(jnp.sum(jnp.exp(z), axis=-1, keepdims=True))
    neg_logp = lse - z                                    # (B, C) = -log_softmax

    class_ids = lax.broadcasted_iota(jnp.int32, (B, C), 1)
    one_hot = (class_ids == labels).astype(jnp.float32)   # all-zero row if label == -1
    valid = (labels != -1).astype(jnp.float32)            # (B, 1)
    # sublane-broadcast of (1, C) class weights; lane-broadcast of validity.
    wv = cls_w * valid                                    # (B, C)

    # per-row terms (lane reductions, keepdims)
    row_denom = jnp.sum(one_hot * wv, axis=-1, keepdims=True)            # weight[y]
    row_nll = jnp.sum(one_hot * wv * neg_logp, axis=-1, keepdims=True)   # w[y]*(-logp[y])
    row_smooth = jnp.sum(wv * neg_logp, axis=-1, keepdims=True)          # -(w*logp).sum
    # NOTE: labels >= C (out of range but != -1) contribute only to the
    # smoothing term, matching the pure-JAX reference; PyTorch would raise.
    row_enum = ((1.0 - label_smoothing) * row_nll
                + (label_smoothing / C) * row_smooth)     # (B, 1) emotion numerator

    # ---- gaze loss: elementwise, masked by validity flag --------------------
    flag = grd_g[:, 0:1]                                  # (B, 1)
    tgt_g = grd_g[:, 1:3]                                 # (B, 2)
    diff = pred_g - tgt_g
    if loss_type == "L1":
        gl = jnp.abs(diff)
    elif loss_type == "L2":
        gl = diff * diff
    elif loss_type == "SmoothL1":                         # beta = 1.0 (PyTorch default)
        ad = jnp.abs(diff)
        gl = jnp.where(ad < 1.0, 0.5 * diff * diff, ad - 0.5)
    else:
        raise ValueError(loss_type)
    row_gl = jnp.sum(gl, axis=-1, keepdims=True) * flag   # (B, 1)

    # ---- fused batch reduction: lane-iota selects (VPU) into one (B, 128)
    # vreg, then a single cross-sublane sum (XLU).  No narrow-slice concat.
    lane = lax.broadcasted_iota(jnp.int32, (B, OUT_WIDTH), 1)
    stacked = jnp.where(lane == 0, row_enum,
              jnp.where(lane == 1, row_denom,
              jnp.where(lane == 2, row_gl,
              jnp.where(lane == 3, flag, 0.0))))
    sums = jnp.sum(stacked, axis=0, keepdims=True)        # (1, 128)

    e_num = sums[:, 0:1]
    denom = sums[:, 1:2]
    gl_sum = sums[:, 2:3]
    flag_sum = sums[:, 3:4]

    # one guarded reciprocal per denominator (untaken where-branch stays finite)
    inv_denom = pl.reciprocal(jnp.maximum(denom, 1e-30), approx=False)
    e_loss = jnp.where(denom > 0.0, e_num * inv_denom, 0.0)   # torch.isnan -> 0.0

    nnz = flag_sum * 2.0
    inv_nnz = pl.reciprocal(jnp.maximum(nnz, 1e-30), approx=False)
    g_loss = jnp.where(nnz > 0.0, gl_sum * inv_nnz, 0.0)

    total = w_emotion * e_loss + w_gaze * g_loss          # (1, 1)

    # lane-dense output row assembled with VPU selects -> one unmasked store
    out_lane = lax.broadcasted_iota(jnp.int32, (1, OUT_WIDTH), 1)
    out_ref[...] = jnp.where(out_lane == 0, total,
                   jnp.where(out_lane == 1, e_loss,
                   jnp.where(out_lane == 2, g_loss, 0.0)))


def total_loss(pred_gazes, pred_emotions, grd_gazes, grd_emotions,
               class_weights, *, loss_type=LOSS_TYPE,
               label_smoothing=LABEL_SMOOTHING, task_weights=TASK_WEIGHTS):
    """Pallas TotalLoss forward. Returns (total_loss, e_loss, g_loss)."""
    B, C = pred_emotions.shape

    logits = pred_emotions.astype(jnp.float32)            # (B, C)
    labels = grd_emotions.reshape(B, 1).astype(jnp.int32)  # (B, 1)
    cls_w = class_weights.astype(jnp.float32).reshape(1, C)  # (1, C)
    pred_g = pred_gazes.astype(jnp.float32)                # (B, 2)
    grd_g = grd_gazes.astype(jnp.float32)                  # (B, 3)

    kernel = functools.partial(
        _total_loss_kernel,
        loss_type=loss_type,
        label_smoothing=float(label_smoothing),
        w_emotion=float(task_weights["emotion"]),
        w_gaze=float(task_weights["gaze"]),
    )

    vmem = pl.BlockSpec(memory_space=pltpu.MemorySpace.VMEM)
    out = pl.pallas_call(
        kernel,
        out_shape=jax.ShapeDtypeStruct((1, OUT_WIDTH), jnp.float32),
        in_specs=[vmem, vmem, vmem, vmem, vmem],
        out_specs=vmem,
    )(logits, labels, cls_w, pred_g, grd_g)
    return out[0, 0], out[0, 1], out[0, 2]


def _reference(pred_gazes, pred_emotions, grd_gazes, grd_emotions,
               class_weights):
    """Pure-JAX replica of the PyTorch forward for a correctness check."""
    B, C = pred_emotions.shape
    logp = jax.nn.log_softmax(pred_emotions.astype(jnp.float32), axis=-1)
    labels = grd_emotions.astype(jnp.int32)
    valid = (labels != -1)
    one_hot = jax.nn.one_hot(jnp.where(valid, labels, 0), C) * valid[:, None]
    w_y = one_hot @ class_weights
    nll_i = -jnp.sum(one_hot * logp, axis=-1)
    smooth_i = -jnp.sum(class_weights[None, :] * logp, axis=-1) * valid
    denom = jnp.sum(w_y)
    nll = jnp.sum(w_y * nll_i) / denom
    smooth = jnp.sum(smooth_i) / denom
    e_loss = (1.0 - LABEL_SMOOTHING) * nll + (LABEL_SMOOTHING / C) * smooth
    e_loss = jnp.where(denom > 0, e_loss, 0.0)

    diff = pred_gazes - grd_gazes[:, 1:]
    gl = diff * diff                        # L2
    gl = gl * grd_gazes[:, 0:1]
    nnz = jnp.sum(grd_gazes[:, 0]) * 2.0
    g_loss = jnp.where(nnz > 0, jnp.sum(gl) / nnz, 0.0)
    total = TASK_WEIGHTS["emotion"] * e_loss + TASK_WEIGHTS["gaze"] * g_loss
    return total, e_loss, g_loss


if __name__ == "__main__":
    key = jax.random.PRNGKey(0)
    k1, k2, k3 = jax.random.split(key, 3)

    B, C = 8, NUM_EMOTIONS
    pred_gazes = jax.random.normal(k1, (B, 2), dtype=jnp.float32)
    pred_emotions = jax.random.normal(k2, (B, C), dtype=jnp.float32)

    # grd_gazes: col 0 = validity flag, cols 1:3 = gaze target
    gaze_tgt = jax.random.normal(k3, (B, 2), dtype=jnp.float32)
    flags = jnp.array([1, 1, 0, 1, 0, 1, 1, 0], dtype=jnp.float32)[:, None]
    grd_gazes = jnp.concatenate([flags, gaze_tgt], axis=1)

    # emotion labels; include an ignore_index (-1)
    grd_emotions = jnp.array([0, 2, 1, -1, 3, 0, 2, 1], dtype=jnp.int32)

    # deterministic class weights (config.train.class_weights)
    class_weights = jnp.array([1.0, 0.5, 2.0, 1.5], dtype=jnp.float32)

    total, e_loss, g_loss = total_loss(
        pred_gazes, pred_emotions, grd_gazes, grd_emotions, class_weights)
    jax.block_until_ready((total, e_loss, g_loss))

    ref_total, ref_e, ref_g = _reference(
        pred_gazes, pred_emotions, grd_gazes, grd_emotions, class_weights)
    assert jnp.allclose(total, ref_total, atol=1e-5, rtol=1e-5)
    assert jnp.allclose(e_loss, ref_e, atol=1e-5, rtol=1e-5)
    assert jnp.allclose(g_loss, ref_g, atol=1e-5, rtol=1e-5)

    print("KERNEL_OK")
</pallas_src>

<mosaic_0001>
module attributes {stable_mosaic.version = 11 : i64} {
  func.func @_total_loss_kernel(%arg0: memref<8x4xf32, #tpu.memory_space<vmem>>, %arg1: memref<8x1xi32, #tpu.memory_space<vmem>>, %arg2: memref<1x4xf32, #tpu.memory_space<vmem>>, %arg3: memref<8x2xf32, #tpu.memory_space<vmem>>, %arg4: memref<8x3xf32, #tpu.memory_space<vmem>>, %arg5: memref<1x128xf32, #tpu.memory_space<vmem>>) attributes {dimension_semantics = [], scalar_prefetch = 0 : i64, scratch_operands = 0 : i64, tpu.core_type = #tpu.core_type<tc>} {
    %c0 = arith.constant 0 : index
    %c0_0 = arith.constant 0 : index
    %0 = vector.load %arg0[%c0, %c0_0] : memref<8x4xf32, #tpu.memory_space<vmem>>, vector<8x4xf32>
    %c0_1 = arith.constant 0 : index
    %c0_2 = arith.constant 0 : index
    %1 = vector.load %arg1[%c0_1, %c0_2] : memref<8x1xi32, #tpu.memory_space<vmem>>, vector<8x1xi32>
    %c0_3 = arith.constant 0 : index
    %c0_4 = arith.constant 0 : index
    %2 = vector.load %arg2[%c0_3, %c0_4] : memref<1x4xf32, #tpu.memory_space<vmem>>, vector<1x4xf32>
    %c0_5 = arith.constant 0 : index
    %c0_6 = arith.constant 0 : index
    %3 = vector.load %arg3[%c0_5, %c0_6] : memref<8x2xf32, #tpu.memory_space<vmem>>, vector<8x2xf32>
    %c0_7 = arith.constant 0 : index
    %c0_8 = arith.constant 0 : index
    %4 = vector.load %arg4[%c0_7, %c0_8] : memref<8x3xf32, #tpu.memory_space<vmem>>, vector<8x3xf32>
    %cst = arith.constant dense<0xFF800000> : vector<8xf32>
    %5 = vector.multi_reduction <maximumf>, %0, %cst [1] : vector<8x4xf32> to vector<8xf32>
    %6 = vector.shape_cast %5 : vector<8xf32> to vector<8x1xf32>
    %7 = vector.broadcast %6 : vector<8x1xf32> to vector<8x4xf32>
    %8 = arith.subf %0, %7 : vector<8x4xf32>
    %9 = math.exp %8 : vector<8x4xf32>
    %cst_9 = arith.constant dense<0.000000e+00> : vector<8xf32>
    %10 = vector.multi_reduction <add>, %9, %cst_9 [1] : vector<8x4xf32> to vector<8xf32>
    %11 = vector.shape_cast %10 : vector<8xf32> to vector<8x1xf32>
    %12 = math.log %11 : vector<8x1xf32>
    %13 = vector.broadcast %12 : vector<8x1xf32> to vector<8x4xf32>
    %14 = arith.subf %13, %8 : vector<8x4xf32>
    %15 = tpu.iota {dimensions = array<i32: 1>} : vector<8x4xi32>
    %16 = vector.broadcast %1 : vector<8x1xi32> to vector<8x4xi32>
    %17 = arith.cmpi eq, %15, %16 : vector<8x4xi32>
    %18 = arith.extui %17 : vector<8x4xi1> to vector<8x4xi32>
    %19 = arith.sitofp %18 : vector<8x4xi32> to vector<8x4xf32>
    %c-1_i32 = arith.constant -1 : i32
    %20 = vector.broadcast %c-1_i32 : i32 to vector<8x1xi32>
    %21 = arith.cmpi ne, %1, %20 : vector<8x1xi32>
    %22 = arith.extui %21 : vector<8x1xi1> to vector<8x1xi32>
    %23 = arith.sitofp %22 : vector<8x1xi32> to vector<8x1xf32>
    %24 = vector.broadcast %2 : vector<1x4xf32> to vector<8x4xf32>
    %25 = vector.broadcast %23 : vector<8x1xf32> to vector<8x4xf32>
    %26 = arith.mulf %24, %25 : vector<8x4xf32>
    %27 = arith.mulf %19, %26 : vector<8x4xf32>
    %cst_10 = arith.constant dense<0.000000e+00> : vector<8xf32>
    %28 = vector.multi_reduction <add>, %27, %cst_10 [1] : vector<8x4xf32> to vector<8xf32>
    %29 = vector.shape_cast %28 : vector<8xf32> to vector<8x1xf32>
    %30 = arith.mulf %19, %26 : vector<8x4xf32>
    %31 = arith.mulf %30, %14 : vector<8x4xf32>
    %cst_11 = arith.constant dense<0.000000e+00> : vector<8xf32>
    %32 = vector.multi_reduction <add>, %31, %cst_11 [1] : vector<8x4xf32> to vector<8xf32>
    %33 = vector.shape_cast %32 : vector<8xf32> to vector<8x1xf32>
    %34 = arith.mulf %26, %14 : vector<8x4xf32>
    %cst_12 = arith.constant dense<0.000000e+00> : vector<8xf32>
    %35 = vector.multi_reduction <add>, %34, %cst_12 [1] : vector<8x4xf32> to vector<8xf32>
    %36 = vector.shape_cast %35 : vector<8xf32> to vector<8x1xf32>
    %cst_13 = arith.constant 0.899999976 : f32
    %37 = vector.broadcast %cst_13 : f32 to vector<8x1xf32>
    %38 = arith.mulf %37, %33 : vector<8x1xf32>
    %cst_14 = arith.constant 2.500000e-02 : f32
    %39 = vector.broadcast %cst_14 : f32 to vector<8x1xf32>
    %40 = arith.mulf %39, %36 : vector<8x1xf32>
    %41 = arith.addf %38, %40 : vector<8x1xf32>
    %42 = vector.extract_strided_slice %4 {offsets = [0, 0], sizes = [8, 1], strides = [1, 1]} : vector<8x3xf32> to vector<8x1xf32>
    %43 = vector.extract_strided_slice %4 {offsets = [0, 1], sizes = [8, 2], strides = [1, 1]} : vector<8x3xf32> to vector<8x2xf32>
    %44 = arith.subf %3, %43 : vector<8x2xf32>
    %45 = arith.mulf %44, %44 : vector<8x2xf32>
    %cst_15 = arith.constant dense<0.000000e+00> : vector<8xf32>
    %46 = vector.multi_reduction <add>, %45, %cst_15 [1] : vector<8x2xf32> to vector<8xf32>
    %47 = vector.shape_cast %46 : vector<8xf32> to vector<8x1xf32>
    %48 = arith.mulf %47, %42 : vector<8x1xf32>
    %49 = tpu.iota {dimensions = array<i32: 1>} : vector<8x128xi32>
    %c0_i32 = arith.constant 0 : i32
    %50 = vector.broadcast %c0_i32 : i32 to vector<8x128xi32>
    %51 = arith.cmpi eq, %49, %50 : vector<8x128xi32>
    %c1_i32 = arith.constant 1 : i32
    %52 = vector.broadcast %c1_i32 : i32 to vector<8x128xi32>
    %53 = arith.cmpi eq, %49, %52 : vector<8x128xi32>
    %c2_i32 = arith.constant 2 : i32
    %54 = vector.broadcast %c2_i32 : i32 to vector<8x128xi32>
    %55 = arith.cmpi eq, %49, %54 : vector<8x128xi32>
    %c3_i32 = arith.constant 3 : i32
    %56 = vector.broadcast %c3_i32 : i32 to vector<8x128xi32>
    %57 = arith.cmpi eq, %49, %56 : vector<8x128xi32>
    %cst_16 = arith.constant 0.000000e+00 : f32
    %58 = vector.shape_cast %42 : vector<8x1xf32> to vector<8x1xf32>
    %59 = vector.broadcast %58 : vector<8x1xf32> to vector<8x128xf32>
    %60 = vector.broadcast %cst_16 : f32 to vector<8x128xf32>
    %61 = arith.select %57, %59, %60 : vector<8x128xi1>, vector<8x128xf32>
    %62 = vector.shape_cast %48 : vector<8x1xf32> to vector<8x1xf32>
    %63 = vector.broadcast %62 : vector<8x1xf32> to vector<8x128xf32>
    %64 = arith.select %55, %63, %61 : vector<8x128xi1>, vector<8x128xf32>
    %65 = vector.shape_cast %29 : vector<8x1xf32> to vector<8x1xf32>
    %66 = vector.broadcast %65 : vector<8x1xf32> to vector<8x128xf32>
    %67 = arith.select %53, %66, %64 : vector<8x128xi1>, vector<8x128xf32>
    %68 = vector.shape_cast %41 : vector<8x1xf32> to vector<8x1xf32>
    %69 = vector.broadcast %68 : vector<8x1xf32> to vector<8x128xf32>
    %70 = arith.select %51, %69, %67 : vector<8x128xi1>, vector<8x128xf32>
    %cst_17 = arith.constant dense<0.000000e+00> : vector<128xf32>
    %71 = vector.multi_reduction <add>, %70, %cst_17 [0] : vector<8x128xf32> to vector<128xf32>
    %72 = vector.shape_cast %71 : vector<128xf32> to vector<1x128xf32>
    %73 = vector.extract_strided_slice %72 {offsets = [0, 0], sizes = [1, 1], strides = [1, 1]} : vector<1x128xf32> to vector<1x1xf32>
    %74 = vector.extract_strided_slice %72 {offsets = [0, 1], sizes = [1, 1], strides = [1, 1]} : vector<1x128xf32> to vector<1x1xf32>
    %75 = vector.extract_strided_slice %72 {offsets = [0, 2], sizes = [1, 1], strides = [1, 1]} : vector<1x128xf32> to vector<1x1xf32>
    %76 = vector.extract_strided_slice %72 {offsets = [0, 3], sizes = [1, 1], strides = [1, 1]} : vector<1x128xf32> to vector<1x1xf32>
    %cst_18 = arith.constant 1.000000e-30 : f32
    %77 = vector.broadcast %cst_18 : f32 to vector<1x1xf32>
    %78 = arith.maximumf %74, %77 : vector<1x1xf32>
    %79 = tpu.reciprocal %78 : vector<1x1xf32> -> vector<1x1xf32>
    %cst_19 = arith.constant 0.000000e+00 : f32
    %80 = vector.broadcast %cst_19 : f32 to vector<1x1xf32>
    %81 = arith.cmpf ogt, %74, %80 : vector<1x1xf32>
    %82 = arith.mulf %73, %79 : vector<1x1xf32>
    %cst_20 = arith.constant 0.000000e+00 : f32
    %83 = vector.broadcast %cst_20 : f32 to vector<1x1xf32>
    %84 = arith.select %81, %82, %83 : vector<1x1xi1>, vector<1x1xf32>
    %cst_21 = arith.constant 2.000000e+00 : f32
    %85 = vector.broadcast %cst_21 : f32 to vector<1x1xf32>
    %86 = arith.mulf %76, %85 : vector<1x1xf32>
    %cst_22 = arith.constant 1.000000e-30 : f32
    %87 = vector.broadcast %cst_22 : f32 to vector<1x1xf32>
    %88 = arith.maximumf %86, %87 : vector<1x1xf32>
    %89 = tpu.reciprocal %88 : vector<1x1xf32> -> vector<1x1xf32>
    %cst_23 = arith.constant 0.000000e+00 : f32
    %90 = vector.broadcast %cst_23 : f32 to vector<1x1xf32>
    %91 = arith.cmpf ogt, %86, %90 : vector<1x1xf32>
    %92 = arith.mulf %75, %89 : vector<1x1xf32>
    %cst_24 = arith.constant 0.000000e+00 : f32
    %93 = vector.broadcast %cst_24 : f32 to vector<1x1xf32>
    %94 = arith.select %91, %92, %93 : vector<1x1xi1>, vector<1x1xf32>
    %cst_25 = arith.constant 0.699999988 : f32
    %95 = vector.broadcast %cst_25 : f32 to vector<1x1xf32>
    %96 = arith.mulf %95, %84 : vector<1x1xf32>
    %cst_26 = arith.constant 3.000000e-01 : f32
    %97 = vector.broadcast %cst_26 : f32 to vector<1x1xf32>
    %98 = arith.mulf %97, %94 : vector<1x1xf32>
    %99 = arith.addf %96, %98 : vector<1x1xf32>
    %100 = tpu.iota {dimensions = array<i32: 1>} : vector<1x128xi32>
    %c0_i32_27 = arith.constant 0 : i32
    %101 = vector.broadcast %c0_i32_27 : i32 to vector<1x128xi32>
    %102 = arith.cmpi eq, %100, %101 : vector<1x128xi32>
    %c1_i32_28 = arith.constant 1 : i32
    %103 = vector.broadcast %c1_i32_28 : i32 to vector<1x128xi32>
    %104 = arith.cmpi eq, %100, %103 : vector<1x128xi32>
    %c2_i32_29 = arith.constant 2 : i32
    %105 = vector.broadcast %c2_i32_29 : i32 to vector<1x128xi32>
    %106 = arith.cmpi eq, %100, %105 : vector<1x128xi32>
    %cst_30 = arith.constant 0.000000e+00 : f32
    %107 = vector.shape_cast %94 : vector<1x1xf32> to vector<1x1xf32>
    %108 = vector.broadcast %107 : vector<1x1xf32> to vector<1x128xf32>
    %109 = vector.broadcast %cst_30 : f32 to vector<1x128xf32>
    %110 = arith.select %106, %108, %109 : vector<1x128xi1>, vector<1x128xf32>
    %111 = vector.shape_cast %84 : vector<1x1xf32> to vector<1x1xf32>
    %112 = vector.broadcast %111 : vector<1x1xf32> to vector<1x128xf32>
    %113 = arith.select %104, %112, %110 : vector<1x128xi1>, vector<1x128xf32>
    %114 = vector.shape_cast %99 : vector<1x1xf32> to vector<1x1xf32>
    %115 = vector.broadcast %114 : vector<1x1xf32> to vector<1x128xf32>
    %116 = arith.select %102, %115, %113 : vector<1x128xi1>, vector<1x128xf32>
    %c0_31 = arith.constant 0 : index
    %c0_32 = arith.constant 0 : index
    %117 = vector.load %arg5[%c0_31, %c0_32] : memref<1x128xf32, #tpu.memory_space<vmem>>, vector<1x128xf32>
    tpu.vector_store %arg5[%c0_31, %c0_32], %116 {strides = array<i32>} : memref<1x128xf32, #tpu.memory_space<vmem>>, vector<1x128xf32>,
    return
  }
}

</mosaic_0001>

<bundles_post_ra>
// kernel: tpu_custom_call.1
= control target key start
LH: loop header
LB: loop body
LE: loop exit
PB: predicated region body
PF: predicated region fallthrough
CT: control target
= control target key end

     0   :  { %vm26_vm0 = vcmask 31744   ;;  %v254_v3 = vmov 0   ;;  %v255_v4 = vmov 0.0   ;;  %s337_s0 = inlined_call_operand.vmem [shape: f32[8,4], index: 0, kind: input, shape index: {}]   ;;  %s338_s1 = inlined_call_operand.vmem [shape: s32[8,1], index: 1, kind: input, shape index: {}]   ;;  %s339_s2 = inlined_call_operand.vmem [shape: f32[1,4], index: 2, kind: input, shape index: {}]   ;;  %s340_s3 = inlined_call_operand.vmem [shape: f32[8,2], index: 3, kind: input, shape index: {}]   ;;  %s341_s4 = inlined_call_operand.vmem [shape: f32[8,3], index: 4, kind: input, shape index: {}]   ;;  %s342_s5 = inlined_call_operand.hbm [shape: f32[1,128], index: 5, kind: output, shape index: {}]  }
   0x1   :  { %v21_v0 = vld [vmem:[%s337_s0] sm:$0xff]  ;;  %214 = vset.pattern.permute.xlu2 %v254_v3  ;;  %213 = vset.pattern.permute.xlu1 %v254_v3 }
   0x2   :  { %v22_v1 = vld [vmem:[%s338_s1] sm:$0xff]  ;;  %v27_v2 = vsel %vm26_vm0, %v21_v0, -inf }
   0x3   :  { %vm47_vm1 = vcmp.ne.s32.totalorder %v22_v1, 4294967295  ;;  %28 = vmax.xlane.f32.xlu0 %v27_v2 }
   0x4   :  { %v204_v5 = vsel %vm47_vm1, 1.0, %v255_v4 }
   0x5   :  { %10 = vsyncpa [#allocation3], 0  ;;  %55 = vperm.xlu2 %214, %v204_v5   ;;  %v25_v6 = vld [vmem:[%s341_s4] sm:$0xff]  ;;  %s256_s0 = smov 127   ;;  %vm80_vm2 = vcmask 15360   ;;  %v39_v28 = vlaneseq  ;;  %s261_s26 = smov [#allocation2]  }
   0x6   :  { %v24_v12 = vld [vmem:[%s340_s3] sm:$0xff]  ;;  %s260_s3 = smov 126   ;;  %s192_s27 = sshll.u32 %s261_s26, 4  ;;  %s193_s27 = int_to_ptr.vmem [resolvable:$true] %s192_s27 }
   0x7   :  { %v219_v19 = vld [vmem:[%s339_s2] ss:$0 sm:$0xff]  ;;  %v311_v29 = vand.u32 127, %v39_v28  ;;  %s257_s2 = smov 1   ;;  %s194_s30 = sshll.u32 %s342_s5, 4  ;;  %s195_s30 = int_to_ptr.hbm [resolvable:$true] %s194_s30 }
   0x9   :  { %vm88_vm4 = vcmp.eq.s32.totalorder %v311_v29, 3  ;;  %vm87_vm5 = vcmp.eq.s32.totalorder %v311_v29, 2  ;;  %vm86_vm6 = vcmp.eq.s32.totalorder %v311_v29, 1  ;;  %vm85_vm7 = vcmp.eq.s32.totalorder %v311_v29, 0 }
  0x17   :  { %75 = vrot.lane.b32.xlu0 %v25_v6, %s256_s0 }
  0x5f   :  { %v56_v18 = vpop.permute.xlu2 %55 }
  0x60   :  { %v58_v22 = vmul.f32 %v219_v19, %v56_v18  ;;  %v259_v18 = vmov 1  }
  0x76   :  { %v29_v7 = vpop.xlane.xlu0 %28 }
  0x77   :  { %v30_v8 = vsub.f32 %v21_v0, %v29_v7 }
  0x79   :  { %v31_v9 = vmul.f32 1.442695, %v30_v8 }
  0x7b   :  { %220 = vpow2.f32 %v31_v9 }
  0x81   :  { %v221_v10 = vpop.eup %220 }
  0x82   :  { %v33_v11 = vsel %vm26_vm0, %v221_v10, 0.0 }
  0x83   :  { %34 = vadd.xlane.f32.xlu1 %v33_v11 }
  0x89   :  { %v76_v13 = vpop.permute.xlu0 %75 }
  0x8a   :  { %v78_v14 = vsub.f32 %v24_v12, %v76_v13 }
  0x8c   :  { %v79_v15 = vmul.f32 %v78_v14, %v78_v14 }
  0x8e   :  { %v81_v16 = vsel %vm80_vm2, %v79_v15, 0.0 }
  0x8f   :  { %82 = vadd.xlane.f32.xlu2 %v81_v16 }
  0x9c   :  { %42 = vperm.xlu1 %213, %v22_v1  }
  0xa4   :  { %216 = vset.pattern.permute.xlu1 %v259_v18 }
  0xa7   :  { %90 = vperm.xlu2 %214, %v25_v6  }
  0xf6   :  { %v35_v17 = vpop.xlane.xlu1 %34 }
  0xf7   :  { %222 = vlog2.f32 %v35_v17  ;;  %v258_v17 = vmov 3  }
  0xf8   :  { %215 = vset.pattern.permute.xlu0 %v258_v17 }
  0xfd   :  { %v223_v20 = vpop.eup %222 }
  0xfe   :  { %v37_v21 = vmul.f32 0.6931472, %v223_v20 }
 0x100   :  { %v38_v23 = vsub.f32 %v37_v21, %v30_v8 }
 0x102   :  { %v83_v24 = vpop.xlane.xlu2 %82  ;;  %v67_v25 = vmul.f32 %v58_v22, %v38_v23 }
 0x103   :  { %v84_v26 = vmul.f32 %v83_v24, %v25_v6 }
 0x104   :  { %v68_v27 = vsel %vm26_vm0, %v67_v25, 0.0 }
 0x105   :  { %69 = vadd.xlane.f32.xlu1 %v68_v27  ;;  %96 = vperm.xlu2 %214, %v84_v26  }
 0x10a   :  { %v91_v36 = vpop.permute.xlu2 %90 }
 0x10b   :  { %v93_v42 = vsel %vm88_vm4, %v91_v36, 0.0 }
 0x10d   :  { %217 = vset.pattern.permute.xlu2 %v259_v18 }
 0x10e   :  { %v43_v30 = vpop.permute.xlu1 %42 }
 0x10f   :  { %vm44_vm3 = vcmp.eq.s32.totalorder %v311_v29, %v43_v30 }
 0x110   :  { %v203_v31 = vsel %vm44_vm3, 1.0, %v255_v4 }
 0x111   :  { %v59_v32 = vmul.f32 %v203_v31, %v58_v22 }
 0x113   :  { %v63_v33 = vmul.f32 %v59_v32, %v38_v23  ;;  %v60_v35 = vsel %vm26_vm0, %v59_v32, 0.0 }
 0x115   :  { %v64_v34 = vsel %vm26_vm0, %v63_v33, 0.0 }
 0x116   :  { %65 = vadd.xlane.f32.xlu0 %v64_v34 }
 0x11e   :  { %61 = vadd.xlane.f32.xlu0 %v60_v35 }
 0x15f   :  { %v97_v40 = vpop.permute.xlu2 %96 }
 0x160   :  { %v99_v43 = vsel %vm87_vm5, %v97_v40, %v93_v42 }
 0x178   :  { %v70_v38 = vpop.xlane.xlu1 %69 }
 0x179   :  { %v72_v41 = vmul.f32 0.025, %v70_v38 }
 0x189   :  { %v66_v37 = vpop.xlane.xlu0 %65 }
 0x18a   :  { %v71_v39 = vmul.f32 0.9, %v66_v37 }
 0x18c   :  { %v73_v44 = vadd.f32 %v72_v41, %v71_v39 }
 0x191   :  { %v62_v45 = vpop.xlane.xlu0 %61 }
 0x192   :  { %v100_v46 = vsel %vm86_vm6, %v62_v45, %v99_v43 }
 0x193   :  { %v101_v47 = vsel %vm85_vm7, %v73_v44, %v100_v46 }
 0x194   :  { %v102_v48 = vrot.slane %v101_v47, 4 }
 0x196   :  { %v103_v49 = vadd.f32 %v102_v48, %v101_v47 }
 0x198   :  { %v104_v50 = vrot.slane %v103_v49, 2 }
 0x19a   :  { %v105_v51 = vadd.f32 %v104_v50, %v103_v49 }
 0x19c   :  { %v106_v52 = vrot.slane %v105_v51, 1 }
 0x19e   :  { %v107_v53 = vadd.f32 %v106_v52, %v105_v51 }
 0x1a0   :  { %v108_v54 = vmax.f32 %v107_v53, 1e-30  ;;  %v134_v55 = vmul.f32 2.0, %v107_v53  ;;  %vm123_vm1 = vcmp.gt.f32.partialorder %v107_v53, 0.0 }
 0x1a2   :  { %224 = vrcp.f32 %v108_v54  ;;  %v135_v56 = vmax.f32 %v134_v55, 1e-30  ;;  %v120_v61 = vand.u32 2147483648, %v108_v54  ;;  %v118_v0 = vand.u32 2147483647, %v108_v54 }
 0x1a3   :  { %vm114_vm9 = vweird.f32 %v108_v54  ;;  %vm150_vm0 = vcmp.gt.f32.partialorder %v134_v55, 0.0 }
 0x1a4   :  { %226 = vrcp.f32 %v135_v56  ;;  %v147_v3 = vand.u32 2147483648, %v135_v56  ;;  %v121_v4 = vor.u32 1.1754944e-38, %v120_v61  ;;  %v145_v6 = vand.u32 2147483647, %v135_v56 }
 0x1a5   :  { %vm119_vm12 = vcmp.eq.f32.partialorder %v118_v0, 8.507059e+37  ;;  %vm141_vm13 = vweird.f32 %v135_v56 }
 0x1a6   :  { %v148_v10 = vor.u32 1.1754944e-38, %v147_v3  ;;  %vm146_vm15 = vcmp.eq.f32.partialorder %v145_v6, 8.507059e+37 }
 0x1a8   :  { %v225_v57 = vpop.eup %224 }
 0x1a9   :  { %v110_v58 = vmul.f32 %v225_v57, %v108_v54  ;;  %vm115_vm8 = vweird.f32 %v225_v57 }
 0x1aa   :  { %v227_v59 = vpop.eup %226  ;;  %vm116_vm10 = vmor %vm114_vm9, %vm115_vm8 }
 0x1ab   :  { %v111_v60 = vsub.f32 1.0, %v110_v58  ;;  %v137_v62 = vmul.f32 %v227_v59, %v135_v56  ;;  %vm142_vm11 = vweird.f32 %v227_v59 }
 0x1ac   :  { %vm143_vm14 = vmor %vm141_vm13, %vm142_vm11 }
 0x1ad   :  { %v112_v63 = vmul.f32 %v225_v57, %v111_v60  ;;  %v138_v1 = vsub.f32 1.0, %v137_v62 }
 0x1af   :  { %v113_v2 = vadd.f32 %v225_v57, %v112_v63  ;;  %v139_v5 = vmul.f32 %v227_v59, %v138_v1 }
 0x1b1   :  { %v117_v7 = vsel %vm116_vm10, %v225_v57, %v113_v2  ;;  %v140_v9 = vadd.f32 %v227_v59, %v139_v5 }
 0x1b2   :  { %v122_v8 = vsel %vm119_vm12, %v121_v4, %v117_v7 }
 0x1b3   :  { %125 = vrot.lane.b32.xlu0 %v122_v8, %s256_s0  ;;  %v144_v11 = vsel %vm143_vm14, %v227_v59, %v140_v9 }
 0x1b4   :  { %v149_v12 = vsel %vm146_vm15, %v148_v10, %v144_v11 }
 0x1b5   :  { %152 = vrot.lane.b32.xlu1 %v149_v12, %s256_s0 }
 0x225   :  { %v126_v15 = vpop.permute.xlu0 %125 }
 0x226   :  { %v128_v16 = vmul.f32 %v126_v15, %v107_v53 }
 0x227   :  { %v153_v13 = vpop.permute.xlu1 %152 }
 0x228   :  { %v155_v14 = vmul.f32 %v153_v13, %v107_v53 }
 0x22a   :  { %157 = vrot.lane.b32.xlu2 %v155_v14, %s257_s2 }
 0x232   :  { %130 = vrot.lane.b32.xlu2 %v128_v16, %s257_s2 }
 0x284   :  { %v158_v19 = vpop.permute.xlu2 %157 }
 0x285   :  { %v160_v20 = vsel %vm150_vm0, %v158_v19, 0.0 }
 0x286   :  { %v162_v21 = vmul.f32 0.3, %v160_v20  ;;  %170 = vperm.xlu0 %215, %v160_v20  }
 0x288   :  { %164 = vrot.lane.b32.xlu2 %v162_v21, %s260_s3 }
 0x28c   :  { %v131_v22 = vpop.permute.xlu2 %130 }
 0x28d   :  { %v133_v23 = vsel %vm123_vm1, %v131_v22, 0.0 }
 0x28e   :  { %176 = vperm.xlu1 %216, %v133_v23   ;;  %218 = vset.pattern.permute.xlu0 %v259_v18  ;;  %v161_v24 = vmul.f32 0.7, %v133_v23 }
 0x2e2   :  { %v165_v25 = vpop.permute.xlu2 %164 }
 0x2e3   :  { %v167_v26 = vadd.f32 %v165_v25, %v161_v24 }
 0x2e5   :  { %182 = vperm.xlu2 %217, %v167_v26  }
 0x2f8   :  { %v171_v27 = vpop.permute.xlu0 %170 }
 0x2f9   :  { %v173_v30 = vsel %vm87_vm5, %v171_v27, 0.0 }
 0x300   :  { %v177_v28 = vpop.permute.xlu1 %176 }
 0x301   :  { %v179_v31 = vsel %vm86_vm6, %v177_v28, %v173_v30 }
 0x33f   :  { %v183_v32 = vpop.permute.xlu2 %182 }
 0x340   :  { %v185_v33 = vsel %vm85_vm7, %v183_v32, %v179_v31 }
 0x341   :  { %186 = vst [vmem:[#allocation2] sm:$0x1] %v185_v33 }
 0x342   :  { %197 = dma.vmem_to_hbm [thread:$0]  %s193_s27, 16, %s195_s30, [#allocation3]  }
 0x343   :  { %252 = dma.done.wait [#allocation3], 16  }
 0x344   :  { %253 = vsyncadd [#allocation3], 4294967280 }
 0x345   :  { %202 = vsyncpa [#allocation3], 1 }

</bundles_post_ra>
